<compile_context>
chip_gen: v7x
topology: tpu7x:2x2x1
jax: 0.10.0
libtpu: 0.0.40
codegen_flags: <defaults>
</compile_context>

<pallas_src>
import functools

import jax
import jax.numpy as jnp
from jax.experimental import pallas as pl
from jax.experimental.pallas import tpu as pltpu

EMBED_DIM = 128      # embedding_dim in the module (lane dim = 128, full tile)
MAX_SEQ_LEN = 512    # max_seq_length in the module
SEQ_LEN = 16         # stand-in for the tokenizer-derived seq_length
                     # TODO(synk): BERT tokenization itself has no Pallas
                     # equivalent; seq_length is taken as a static int here.


def _posit_embed_kernel(table_hbm, out_hbm, copy_sem, *, seq_len):
    """One direct HBM->HBM DMA of the rows the module reads.

    table_hbm : HBM ref (max_seq_len, emb)  -- embedding table, left in place
    out_hbm   : HBM ref (1, seq_len, emb)   -- kernel output buffer
    copy_sem  : DMA semaphore scratch
    """
    # positions are statically arange(0, seq_len) -> the window start is 0.
    cp = pltpu.make_async_copy(
        table_hbm.at[pl.ds(0, seq_len)],   # (seq_len, emb) rows 0..seq_len-1
        out_hbm.at[0],                     # (seq_len, emb) view of the output
        copy_sem,
    )
    cp.start()
    cp.wait()


def positional_embed(table: jax.Array, seq_len: int) -> jax.Array:
    """table: (max_seq_len, embedding_dim) float32; seq_len: static int.

    Returns (1, seq_len, embedding_dim) float32, identical to the PyTorch
    forward (embedding lookup of arange(0, seq_len), unsqueezed).
    """
    max_len, emb = table.shape

    # Static bounds check (there is no runtime OOB check on the DMA source).
    if seq_len > max_len:
        raise ValueError(f"seq_len={seq_len} exceeds max_seq_len={max_len}")
    if seq_len <= 0:
        raise ValueError("seq_len must be positive")

    kernel = functools.partial(_posit_embed_kernel, seq_len=seq_len)

    bytes_moved = 2 * seq_len * emb * table.dtype.itemsize  # read + write

    return pl.pallas_call(
        kernel,
        out_shape=jax.ShapeDtypeStruct((1, seq_len, emb), table.dtype),
        in_specs=[pl.BlockSpec(memory_space=pl.ANY)],    # table stays in HBM
        out_specs=pl.BlockSpec(memory_space=pl.ANY),     # write output via DMA
        scratch_shapes=[pltpu.SemaphoreType.DMA(())],
        cost_estimate=pl.CostEstimate(
            flops=0, transcendentals=0, bytes_accessed=bytes_moved),
    )(table)


if __name__ == "__main__":
    key = jax.random.PRNGKey(0)

    # nn.Embedding(max_seq_length, embedding_dim) default init ~ N(0, 1)
    embed_table = jax.random.normal(
        key, (MAX_SEQ_LEN, EMBED_DIM), dtype=jnp.float32)

    out = positional_embed(embed_table, SEQ_LEN)
    out = jax.block_until_ready(out)

    # Reference check: plain-JAX gather of arange(0, seq_len).
    positions = jnp.arange(SEQ_LEN, dtype=jnp.int32)
    ref = jnp.take(embed_table, positions, axis=0)[None, ...]

    assert out.shape == (1, SEQ_LEN, EMBED_DIM), out.shape
    assert out.dtype == jnp.float32, out.dtype
    assert jnp.array_equal(out, ref), "mismatch vs reference gather"

    print("KERNEL_OK")
</pallas_src>

<mosaic_0001>
module attributes {stable_mosaic.version = 11 : i64} {
  func.func @_posit_embed_kernel(%arg0: memref<512x128xf32, #tpu.memory_space<any>>, %arg1: memref<1x16x128xf32, #tpu.memory_space<any>>, %arg2: memref<!tpu.dma_semaphore, #tpu.memory_space<semaphore_mem>>) attributes {dimension_semantics = [], scalar_prefetch = 0 : i64, scratch_operands = 1 : i64, tpu.core_type = #tpu.core_type<tc>} {
    %c0_i32 = arith.constant 0 : i32
    %c0_i32_0 = arith.constant 0 : i32
    %c0_i32_1 = arith.constant 0 : i32
    %0 = tpu.memref_slice %arg0[%c0_i32_0, %c0_i32_1] : memref<512x128xf32, #tpu.memory_space<any>> -> memref<16x128xf32, #tpu.memory_space<any>>
    %c0_i32_2 = arith.constant 0 : i32
    %c0_i32_3 = arith.constant 0 : i32
    %1 = tpu.memref_slice %arg1[%c0_i32, %c0_i32_2, %c0_i32_3] : memref<1x16x128xf32, #tpu.memory_space<any>> -> memref<1x16x128xf32, #tpu.memory_space<any>>
    %2 = tpu.memref_squeeze %1 : memref<1x16x128xf32, #tpu.memory_space<any>> -> memref<16x128xf32, #tpu.memory_space<any>>
    tpu.enqueue_dma source(%0 : memref<16x128xf32, #tpu.memory_space<any>>) target(%2 : memref<16x128xf32, #tpu.memory_space<any>>) target_semaphore(%arg2 : memref<!tpu.dma_semaphore, #tpu.memory_space<semaphore_mem>>)
    %c0_i32_4 = arith.constant 0 : i32
    %c0_i32_5 = arith.constant 0 : i32
    %c0_i32_6 = arith.constant 0 : i32
    %3 = tpu.memref_slice %arg0[%c0_i32_5, %c0_i32_6] : memref<512x128xf32, #tpu.memory_space<any>> -> memref<16x128xf32, #tpu.memory_space<any>>
    %c0_i32_7 = arith.constant 0 : i32
    %c0_i32_8 = arith.constant 0 : i32
    %4 = tpu.memref_slice %arg1[%c0_i32_4, %c0_i32_7, %c0_i32_8] : memref<1x16x128xf32, #tpu.memory_space<any>> -> memref<1x16x128xf32, #tpu.memory_space<any>>
    %5 = tpu.memref_squeeze %4 : memref<1x16x128xf32, #tpu.memory_space<any>> -> memref<16x128xf32, #tpu.memory_space<any>>
    tpu.wait_dma2 semaphore(%arg2 : memref<!tpu.dma_semaphore, #tpu.memory_space<semaphore_mem>>) src(%3 : memref<16x128xf32, #tpu.memory_space<any>>) dst(%5 : memref<16x128xf32, #tpu.memory_space<any>>)
    return
  }
}

</mosaic_0001>

<bundles_post_ra>
// kernel: tpu_custom_call.1
= control target key start
LH: loop header
LB: loop body
LE: loop exit
PB: predicated region body
PF: predicated region fallthrough
CT: control target
= control target key end

     0   :  { %s34_s6 = smov [#allocation2]   ;;  %s35_s7 = smov [#allocation3]   ;;  %s53_s0 = inlined_call_operand.hbm [shape: f32[512,128], index: 0, kind: input, shape index: {}]   ;;  %s54_s1 = inlined_call_operand.hbm [shape: f32[1,16,128], index: 1, kind: output, shape index: {}]  }
   0x1   :  { %s36_s8 = smov 0  }
   0x2   :  { %18 = dma.general %s53_s0, 256, %s54_s1, %s34_s6, %s35_s7, [#allocation4], %s36_s8, 0  }
   0x3   :  { %32 = dma.done.wait [#allocation2], 256 }
   0x4   :  { %33 = vsyncadd [#allocation2], 4294967040 }
   0x5   :  { %22 = vsyncmov [#allocation2] }
   0x8   :  { %s23_s13 = vpop.sfrf %22 }
   0x9   :  { %p28_p0 = scmp.ne.s32.totalorder %s23_s13, 0 }
   0xb   :  { %27 = shalt.err (%p28_p0)  }

</bundles_post_ra>
